<compile_context>
chip_gen: v7x
topology: tpu7x:2x2x1
jax: 0.10.0
libtpu: 0.0.40
codegen_flags: <defaults>
</compile_context>

<pallas_src>
import functools

import jax
import jax.numpy as jnp
from jax import lax
from jax.experimental import pallas as pl
from jax.experimental.pallas import tpu as pltpu


# ----------------------------- configuration ------------------------------
HIDDEN = 32          # config.hidden_size
FFN = 64             # config.intermediate_size
NUM_EXPERTS = 4      # config.num_local_experts
TOP_K = 2            # config.num_experts_per_tok
LORA_R = 4
LORA_ALPHA = 8
SCALING = LORA_ALPHA / LORA_R
BATCH = 2
SEQ = 8


def _softplus(z):
    # numerically stable softplus (matches torch.nn.functional.softplus)
    return jnp.maximum(z, 0.0) + jnp.log1p(jnp.exp(-jnp.abs(z)))


def _silu(z):
    return z * (1.0 / (1.0 + jnp.exp(-z)))


# --------------------------- fused MoE kernel ------------------------------
def lora_moe_kernel(x_ref, noise_ref, wrn_ref, onehot_ref, wgu_ref, wdn_ref,
                    out_ref, logits_ref, *, num_experts, top_k, ffn):
    """Noisy-top-k router + all experts (LoRA folded) for one token tile."""
    x = x_ref[...].astype(jnp.float32)                                     # (Tb, H)

    # ---- router: ONE fused (H, 2E) matmul, f32 (tiny, keeps top-k stable) ----
    # TODO(synk): at Tb>=128 on v5e cast the router matmul inputs to bf16 (keep
    # f32 accumulation / softmax / top-k) to avoid multi-pass f32 MXU emulation.
    rl = jnp.dot(x, wrn_ref[...], preferred_element_type=jnp.float32)      # (Tb, 2E)
    logits = rl[:, :num_experts]
    noise_logits = rl[:, num_experts:]
    noisy = logits + noise_ref[...].astype(jnp.float32) * _softplus(noise_logits)
    logits_ref[...] = noisy.astype(logits_ref.dtype)

    # softmax over experts in f32 (matches F.softmax(..., dtype=torch.float))
    m = jnp.max(noisy, axis=-1, keepdims=True)
    p = jnp.exp(noisy - m)
    routing = p / jnp.sum(p, axis=-1, keepdims=True)                       # (Tb, E)

    # top-k by iterative masking (lowest index wins ties, like torch.topk)
    iota = lax.broadcasted_iota(jnp.int32, routing.shape, 1)
    remaining = routing
    selected = jnp.zeros(routing.shape, dtype=jnp.bool_)
    for _ in range(top_k):
        mx = jnp.max(remaining, axis=-1, keepdims=True)
        is_max = remaining == mx
        first = jnp.min(jnp.where(is_max, iota, num_experts), axis=-1, keepdims=True)
        one = iota == first
        selected = jnp.logical_or(selected, one)
        remaining = jnp.where(one, -1.0, remaining)

    picked = jnp.where(selected, routing, 0.0)
    combine = picked / jnp.sum(picked, axis=-1, keepdims=True)             # (Tb, E) f32

    # ---- experts: LoRA pre-folded, all experts fused into two wide matmuls ----
    xb = x.astype(jnp.bfloat16)
    # gate/up for every expert at once; lanes [0, E*F) = gates, [E*F, 2*E*F) = ups
    gu = jnp.dot(xb, wgu_ref[...], preferred_element_type=jnp.float32)     # (Tb, 2*E*F)
    ef = num_experts * ffn
    h_all = _silu(gu[:, :ef]) * gu[:, ef:]                                 # (Tb, E*F) f32

    # expand per-token combine weights over FFN lanes with one tiny one-hot
    # matmul (MXU) instead of E full-width VPU selects.
    w_exp = jnp.dot(combine, onehot_ref[...], preferred_element_type=jnp.float32)
    h_w = h_all * w_exp                                                    # (Tb, E*F)

    # weighted sum over experts folded into ONE stacked down-projection matmul
    out = jnp.dot(h_w.astype(jnp.bfloat16), wdn_ref[...],
                  preferred_element_type=jnp.float32)                      # (Tb, H)
    out_ref[...] = out.astype(out_ref.dtype)


# --------------------- one-time weight preparation --------------------------
def prepare_moe_weights(params):
    """Fold LoRA adapters + stack experts.  Call ONCE when params change."""
    H, E, F = HIDDEN, NUM_EXPERTS, FFN
    wg_eff = params["wg"][None] + SCALING * jnp.einsum("ehr,erf->ehf", params["ag"], params["bg"])
    wu_eff = params["wu"][None] + SCALING * jnp.einsum("ehr,erf->ehf", params["au"], params["bu"])
    wd_eff = params["wd"][None] + SCALING * jnp.einsum("efr,erh->efh", params["ad"], params["bd"])

    # fused router weight: [topkroute_linear | noise_linear] -> (H, 2E)
    w_rn = jnp.concatenate([params["wr"], params["wn"]], axis=1).astype(jnp.float32)

    # stack experts: gate+up for all experts as a single (H, 2*E*F) bf16 matrix
    w_gu = jnp.concatenate(
        [jnp.transpose(wg_eff, (1, 0, 2)).reshape(H, E * F),
         jnp.transpose(wu_eff, (1, 0, 2)).reshape(H, E * F)],
        axis=1).astype(jnp.bfloat16)                                       # (32, 512)
    # stacked down projections in the same expert/lane order: (E*F, H)
    w_dn = wd_eff.reshape(E * F, H).astype(jnp.bfloat16)                   # (256, 32)

    # constant 0/1 expert->lane expansion matrix: onehot[e, l] = (l // F == e)
    onehot = (jnp.arange(E * F)[None, :] // F == jnp.arange(E)[:, None]).astype(jnp.float32)

    return {"w_rn": w_rn, "w_gu": w_gu, "w_dn": w_dn, "onehot": onehot}


# -------------------------------- wrapper ----------------------------------
def lora_moe_block(hidden_states, prepared, noise):
    """hidden_states: (B, S, H) f32.  Returns (final_hidden_states, router_logits)."""
    B, S, H = hidden_states.shape
    T = B * S
    E, F = NUM_EXPERTS, FFN
    dtype = hidden_states.dtype

    x = hidden_states.reshape(T, H)

    # ---- token tile: one big tile at toy sizes (grid=1); cap at 256 so the
    # MXU M dim is filled and >=2 parallel grid steps exist at production batch
    t_blk = min(pl.cdiv(T, 16) * 16, 256)
    T_pad = pl.cdiv(T, t_blk) * t_blk
    if T_pad != T:
        x = jnp.pad(x, ((0, T_pad - T), (0, 0)))
        noise = jnp.pad(noise, ((0, T_pad - T), (0, 0)))
    n_tiles = T_pad // t_blk

    kernel = functools.partial(lora_moe_kernel, num_experts=E, top_k=TOP_K, ffn=F)
    out_pad, logits_pad = pl.pallas_call(
        kernel,
        out_shape=(jax.ShapeDtypeStruct((T_pad, H), dtype),
                   jax.ShapeDtypeStruct((T_pad, E), jnp.float32)),
        grid_spec=pltpu.PrefetchScalarGridSpec(
            num_scalar_prefetch=0,
            grid=(n_tiles,),
            in_specs=[
                pl.BlockSpec((t_blk, H), lambda i: (i, 0)),        # x tile
                pl.BlockSpec((t_blk, E), lambda i: (i, 0)),        # router noise tile
                pl.BlockSpec((H, 2 * E), lambda i: (0, 0)),        # fused router weight
                pl.BlockSpec((E, E * F), lambda i: (0, 0)),        # expert one-hot expansion
                pl.BlockSpec((H, 2 * E * F), lambda i: (0, 0)),    # fused gate/up (all experts)
                pl.BlockSpec((E * F, H), lambda i: (0, 0)),        # stacked down (all experts)
            ],
            out_specs=[
                pl.BlockSpec((t_blk, H), lambda i: (i, 0)),
                pl.BlockSpec((t_blk, E), lambda i: (i, 0)),
            ],
        ),
        compiler_params=pltpu.CompilerParams(
            dimension_semantics=("parallel",)),
    )(x, noise, prepared["w_rn"], prepared["onehot"], prepared["w_gu"], prepared["w_dn"])

    return out_pad[:T].reshape(B, S, H), logits_pad[:T]


# -------------------------- pure-JAX reference ------------------------------
def reference(x, params, noise):
    logits = x @ params["wr"]
    noise_logits = x @ params["wn"]
    noisy = logits + noise * _softplus(noise_logits)
    routing = jax.nn.softmax(noisy.astype(jnp.float32), axis=-1)
    topw, topi = jax.lax.top_k(routing, TOP_K)
    topw = topw / topw.sum(-1, keepdims=True)
    out = jnp.zeros_like(x)
    for e in range(NUM_EXPERTS):
        gate = x @ params["wg"] + SCALING * (x @ params["ag"][e]) @ params["bg"][e]
        up = x @ params["wu"] + SCALING * (x @ params["au"][e]) @ params["bu"][e]
        h = _silu(gate) * up
        d = h @ params["wd"] + SCALING * (h @ params["ad"][e]) @ params["bd"][e]
        w_e = jnp.sum(jnp.where(topi == e, topw, 0.0), axis=-1)
        out = out + d * w_e[:, None]
    return out, noisy


# ---------------------------------- main ------------------------------------
def init_params(key):
    ks = jax.random.split(key, 12)
    s = 0.05
    return {
        # router (NoisyTopkRouter): weights stored as (H, E)
        "wr": s * jax.random.normal(ks[0], (HIDDEN, NUM_EXPERTS), jnp.float32),
        "wn": s * jax.random.normal(ks[1], (HIDDEN, NUM_EXPERTS), jnp.float32),
        # shared MLP weights, stored (in, out)
        "wg": s * jax.random.normal(ks[2], (HIDDEN, FFN), jnp.float32),
        "wu": s * jax.random.normal(ks[3], (HIDDEN, FFN), jnp.float32),
        "wd": s * jax.random.normal(ks[4], (FFN, HIDDEN), jnp.float32),
        # per-expert LoRA adapters
        "ag": s * jax.random.normal(ks[5], (NUM_EXPERTS, HIDDEN, LORA_R), jnp.float32),
        "bg": s * jax.random.normal(ks[6], (NUM_EXPERTS, LORA_R, FFN), jnp.float32),
        "au": s * jax.random.normal(ks[7], (NUM_EXPERTS, HIDDEN, LORA_R), jnp.float32),
        "bu": s * jax.random.normal(ks[8], (NUM_EXPERTS, LORA_R, FFN), jnp.float32),
        "ad": s * jax.random.normal(ks[9], (NUM_EXPERTS, FFN, LORA_R), jnp.float32),
        "bd": s * jax.random.normal(ks[10], (NUM_EXPERTS, LORA_R, HIDDEN), jnp.float32),
    }


if __name__ == "__main__":
    key = jax.random.PRNGKey(0)
    k_x, k_noise, k_p = jax.random.split(key, 3)

    hidden_states = jax.random.normal(k_x, (BATCH, SEQ, HIDDEN), jnp.float32)
    # deterministic stand-in for torch.randn_like(logits) in the noisy router
    noise = jax.random.normal(k_noise, (BATCH * SEQ, NUM_EXPERTS), jnp.float32)
    params = init_params(k_p)

    # hoisted: LoRA fold / expert stacking / bf16 cast done once per param set
    prepared = jax.tree_util.tree_map(jax.block_until_ready, prepare_moe_weights(params))

    out, router_logits = lora_moe_block(hidden_states, prepared, noise)
    out = jax.block_until_ready(out)
    router_logits = jax.block_until_ready(router_logits)

    ref_out, ref_logits = reference(hidden_states.reshape(-1, HIDDEN), params, noise)
    assert out.shape == (BATCH, SEQ, HIDDEN)
    assert router_logits.shape == (BATCH * SEQ, NUM_EXPERTS)
    # router path is f32 end-to-end -> tight tolerance
    assert jnp.allclose(router_logits, ref_logits, atol=1e-4, rtol=1e-4)
    # expert matmuls run bf16 on the MXU with f32 accumulation -> looser tolerance
    assert jnp.allclose(out.reshape(-1, HIDDEN), ref_out, atol=2e-2, rtol=1e-2)

    print("KERNEL_OK")
</pallas_src>

<mosaic_0001>
module attributes {stable_mosaic.version = 11 : i64} {
  func.func @lora_moe_kernel(%arg0: i32, %arg1: memref<16x32xf32, #tpu.memory_space<vmem>>, %arg2: memref<16x4xf32, #tpu.memory_space<vmem>>, %arg3: memref<32x8xf32, #tpu.memory_space<vmem>>, %arg4: memref<4x256xf32, #tpu.memory_space<vmem>>, %arg5: memref<32x512xbf16, #tpu.memory_space<vmem>>, %arg6: memref<256x32xbf16, #tpu.memory_space<vmem>>, %arg7: memref<16x32xf32, #tpu.memory_space<vmem>>, %arg8: memref<16x4xf32, #tpu.memory_space<vmem>>) attributes {dimension_semantics = [#tpu.dimension_semantics<parallel>], iteration_bounds = array<i64: 1>, scalar_prefetch = 0 : i64, scratch_operands = 0 : i64, tpu.core_type = #tpu.core_type<tc>, window_params = [{transform_indices = @transform_0, window_bounds = array<i64: 16, 32>}, {transform_indices = @transform_1, window_bounds = array<i64: 16, 4>}, {pipeline_mode = #tpu.pipeline_mode<synchronous>, transform_indices = @transform_2, window_bounds = array<i64: 32, 8>}, {pipeline_mode = #tpu.pipeline_mode<synchronous>, transform_indices = @transform_3, window_bounds = array<i64: 4, 256>}, {pipeline_mode = #tpu.pipeline_mode<synchronous>, transform_indices = @transform_4, window_bounds = array<i64: 32, 512>}, {pipeline_mode = #tpu.pipeline_mode<synchronous>, transform_indices = @transform_5, window_bounds = array<i64: 256, 32>}, {transform_indices = @transform_6, window_bounds = array<i64: 16, 32>}, {transform_indices = @transform_7, window_bounds = array<i64: 16, 4>}]} {
    %c0 = arith.constant 0 : index
    %c0_0 = arith.constant 0 : index
    %0 = vector.load %arg1[%c0, %c0_0] : memref<16x32xf32, #tpu.memory_space<vmem>>, vector<16x32xf32>
    %c0_1 = arith.constant 0 : index
    %c0_2 = arith.constant 0 : index
    %1 = vector.load %arg3[%c0_1, %c0_2] : memref<32x8xf32, #tpu.memory_space<vmem>>, vector<32x8xf32>
    %cst = arith.constant dense<0.000000e+00> : vector<16x8xf32>
    %2 = tpu.matmul %0, %1, %cst {dimension_numbers = #tpu.dot_dimension_numbers<[1], [0], [0], [1], [0, 0, 1, 1], [], []>} : vector<16x32xf32>, vector<32x8xf32>, vector<16x8xf32> -> vector<16x8xf32>
    %3 = vector.extract_strided_slice %2 {offsets = [0, 0], sizes = [16, 4], strides = [1, 1]} : vector<16x8xf32> to vector<16x4xf32>
    %4 = vector.extract_strided_slice %2 {offsets = [0, 4], sizes = [16, 4], strides = [1, 1]} : vector<16x8xf32> to vector<16x4xf32>
    %c0_3 = arith.constant 0 : index
    %c0_4 = arith.constant 0 : index
    %5 = vector.load %arg2[%c0_3, %c0_4] : memref<16x4xf32, #tpu.memory_space<vmem>>, vector<16x4xf32>
    %cst_5 = arith.constant 0.000000e+00 : f32
    %6 = vector.broadcast %cst_5 : f32 to vector<16x4xf32>
    %7 = arith.maximumf %4, %6 : vector<16x4xf32>
    %8 = math.absf %4 : vector<16x4xf32>
    %cst_6 = arith.constant 0.000000e+00 : f32
    %9 = vector.broadcast %cst_6 : f32 to vector<16x4xf32>
    %10 = arith.subf %9, %8 : vector<16x4xf32>
    %11 = math.exp %10 : vector<16x4xf32>
    %12 = math.log1p %11 : vector<16x4xf32>
    %13 = arith.addf %7, %12 : vector<16x4xf32>
    %14 = arith.mulf %5, %13 : vector<16x4xf32>
    %15 = arith.addf %3, %14 : vector<16x4xf32>
    %c0_7 = arith.constant 0 : index
    %c0_8 = arith.constant 0 : index
    %16 = vector.load %arg8[%c0_7, %c0_8] : memref<16x4xf32, #tpu.memory_space<vmem>>, vector<16x4xf32>
    tpu.vector_store %arg8[%c0_7, %c0_8], %15 {strides = array<i32>} : memref<16x4xf32, #tpu.memory_space<vmem>>, vector<16x4xf32>,
    %cst_9 = arith.constant dense<0xFF800000> : vector<16xf32>
    %17 = vector.multi_reduction <maximumf>, %15, %cst_9 [1] : vector<16x4xf32> to vector<16xf32>
    %18 = vector.shape_cast %17 : vector<16xf32> to vector<16x1xf32>
    %19 = vector.broadcast %18 : vector<16x1xf32> to vector<16x4xf32>
    %20 = arith.subf %15, %19 : vector<16x4xf32>
    %21 = math.exp %20 : vector<16x4xf32>
    %cst_10 = arith.constant dense<0.000000e+00> : vector<16xf32>
    %22 = vector.multi_reduction <add>, %21, %cst_10 [1] : vector<16x4xf32> to vector<16xf32>
    %23 = vector.shape_cast %22 : vector<16xf32> to vector<16x1xf32>
    %24 = vector.broadcast %23 : vector<16x1xf32> to vector<16x4xf32>
    %25 = arith.divf %21, %24 : vector<16x4xf32>
    %26 = tpu.iota {dimensions = array<i32: 1>} : vector<16x4xi32>
    %false = arith.constant false
    %27 = vector.broadcast %false : i1 to vector<16x4xi1>
    %cst_11 = arith.constant dense<0xFF800000> : vector<16xf32>
    %28 = vector.multi_reduction <maximumf>, %25, %cst_11 [1] : vector<16x4xf32> to vector<16xf32>
    %29 = vector.shape_cast %28 : vector<16xf32> to vector<16x1xf32>
    %30 = vector.broadcast %29 : vector<16x1xf32> to vector<16x4xf32>
    %31 = arith.cmpf oeq, %25, %30 : vector<16x4xf32>
    %c4_i32 = arith.constant 4 : i32
    %32 = vector.broadcast %c4_i32 : i32 to vector<16x4xi32>
    %33 = arith.select %31, %26, %32 : vector<16x4xi1>, vector<16x4xi32>
    %cst_12 = arith.constant dense<2147483647> : vector<16xi32>
    %34 = vector.multi_reduction <minsi>, %33, %cst_12 [1] : vector<16x4xi32> to vector<16xi32>
    %35 = vector.shape_cast %34 : vector<16xi32> to vector<16x1xi32>
    %36 = vector.broadcast %35 : vector<16x1xi32> to vector<16x4xi32>
    %37 = arith.cmpi eq, %26, %36 : vector<16x4xi32>
    %38 = arith.ori %27, %37 : vector<16x4xi1>
    %cst_13 = arith.constant -1.000000e+00 : f32
    %39 = vector.broadcast %cst_13 : f32 to vector<16x4xf32>
    %40 = arith.select %37, %39, %25 : vector<16x4xi1>, vector<16x4xf32>
    %cst_14 = arith.constant dense<0xFF800000> : vector<16xf32>
    %41 = vector.multi_reduction <maximumf>, %40, %cst_14 [1] : vector<16x4xf32> to vector<16xf32>
    %42 = vector.shape_cast %41 : vector<16xf32> to vector<16x1xf32>
    %43 = vector.broadcast %42 : vector<16x1xf32> to vector<16x4xf32>
    %44 = arith.cmpf oeq, %40, %43 : vector<16x4xf32>
    %c4_i32_15 = arith.constant 4 : i32
    %45 = vector.broadcast %c4_i32_15 : i32 to vector<16x4xi32>
    %46 = arith.select %44, %26, %45 : vector<16x4xi1>, vector<16x4xi32>
    %cst_16 = arith.constant dense<2147483647> : vector<16xi32>
    %47 = vector.multi_reduction <minsi>, %46, %cst_16 [1] : vector<16x4xi32> to vector<16xi32>
    %48 = vector.shape_cast %47 : vector<16xi32> to vector<16x1xi32>
    %49 = vector.broadcast %48 : vector<16x1xi32> to vector<16x4xi32>
    %50 = arith.cmpi eq, %26, %49 : vector<16x4xi32>
    %51 = arith.ori %38, %50 : vector<16x4xi1>
    %cst_17 = arith.constant 0.000000e+00 : f32
    %52 = vector.broadcast %cst_17 : f32 to vector<16x4xf32>
    %53 = arith.select %51, %25, %52 : vector<16x4xi1>, vector<16x4xf32>
    %cst_18 = arith.constant dense<0.000000e+00> : vector<16xf32>
    %54 = vector.multi_reduction <add>, %53, %cst_18 [1] : vector<16x4xf32> to vector<16xf32>
    %55 = vector.shape_cast %54 : vector<16xf32> to vector<16x1xf32>
    %56 = vector.broadcast %55 : vector<16x1xf32> to vector<16x4xf32>
    %57 = arith.divf %53, %56 : vector<16x4xf32>
    %58 = arith.truncf %0 : vector<16x32xf32> to vector<16x32xbf16>
    %c0_19 = arith.constant 0 : index
    %c0_20 = arith.constant 0 : index
    %59 = vector.load %arg5[%c0_19, %c0_20] : memref<32x512xbf16, #tpu.memory_space<vmem>>, vector<32x512xbf16>
    %cst_21 = arith.constant dense<0.000000e+00> : vector<16x512xf32>
    %60 = tpu.matmul %58, %59, %cst_21 {dimension_numbers = #tpu.dot_dimension_numbers<[1], [0], [0], [1], [0, 0, 1, 1], [], []>} : vector<16x32xbf16>, vector<32x512xbf16>, vector<16x512xf32> -> vector<16x512xf32>
    %61 = vector.extract_strided_slice %60 {offsets = [0, 0], sizes = [16, 256], strides = [1, 1]} : vector<16x512xf32> to vector<16x256xf32>
    %cst_22 = arith.constant 0.000000e+00 : f32
    %62 = vector.broadcast %cst_22 : f32 to vector<16x256xf32>
    %63 = arith.subf %62, %61 : vector<16x256xf32>
    %64 = math.exp %63 : vector<16x256xf32>
    %cst_23 = arith.constant 1.000000e+00 : f32
    %65 = vector.broadcast %cst_23 : f32 to vector<16x256xf32>
    %66 = arith.addf %65, %64 : vector<16x256xf32>
    %cst_24 = arith.constant 1.000000e+00 : f32
    %67 = vector.broadcast %cst_24 : f32 to vector<16x256xf32>
    %68 = arith.divf %67, %66 : vector<16x256xf32>
    %69 = arith.mulf %61, %68 : vector<16x256xf32>
    %70 = vector.extract_strided_slice %60 {offsets = [0, 256], sizes = [16, 256], strides = [1, 1]} : vector<16x512xf32> to vector<16x256xf32>
    %71 = arith.mulf %69, %70 : vector<16x256xf32>
    %c0_25 = arith.constant 0 : index
    %c0_26 = arith.constant 0 : index
    %72 = vector.load %arg4[%c0_25, %c0_26] : memref<4x256xf32, #tpu.memory_space<vmem>>, vector<4x256xf32>
    %cst_27 = arith.constant dense<0.000000e+00> : vector<16x256xf32>
    %73 = tpu.matmul %57, %72, %cst_27 {dimension_numbers = #tpu.dot_dimension_numbers<[1], [0], [0], [1], [0, 0, 1, 1], [], []>} : vector<16x4xf32>, vector<4x256xf32>, vector<16x256xf32> -> vector<16x256xf32>
    %74 = arith.mulf %71, %73 : vector<16x256xf32>
    %75 = arith.truncf %74 : vector<16x256xf32> to vector<16x256xbf16>
    %c0_28 = arith.constant 0 : index
    %c0_29 = arith.constant 0 : index
    %76 = vector.load %arg6[%c0_28, %c0_29] : memref<256x32xbf16, #tpu.memory_space<vmem>>, vector<256x32xbf16>
    %cst_30 = arith.constant dense<0.000000e+00> : vector<16x32xf32>
    %77 = tpu.matmul %75, %76, %cst_30 {dimension_numbers = #tpu.dot_dimension_numbers<[1], [0], [0], [1], [0, 0, 1, 1], [], []>} : vector<16x256xbf16>, vector<256x32xbf16>, vector<16x32xf32> -> vector<16x32xf32>
    %c0_31 = arith.constant 0 : index
    %c0_32 = arith.constant 0 : index
    %78 = vector.load %arg7[%c0_31, %c0_32] : memref<16x32xf32, #tpu.memory_space<vmem>>, vector<16x32xf32>
    tpu.vector_store %arg7[%c0_31, %c0_32], %77 {strides = array<i32>} : memref<16x32xf32, #tpu.memory_space<vmem>>, vector<16x32xf32>,
    return
  }
  func.func @transform_0(%arg0: i32) -> (i32, i32) {
    %c0_i32 = arith.constant 0 : i32
    %c0_i32_0 = arith.constant 0 : i32
    return %arg0, %c0_i32 : i32, i32
  }
  func.func @transform_1(%arg0: i32) -> (i32, i32) {
    %c0_i32 = arith.constant 0 : i32
    %c0_i32_0 = arith.constant 0 : i32
    return %arg0, %c0_i32 : i32, i32
  }
  func.func @transform_2(%arg0: i32) -> (i32, i32) {
    %c0_i32 = arith.constant 0 : i32
    %c0_i32_0 = arith.constant 0 : i32
    %c0_i32_1 = arith.constant 0 : i32
    return %c0_i32, %c0_i32_0 : i32, i32
  }
  func.func @transform_3(%arg0: i32) -> (i32, i32) {
    %c0_i32 = arith.constant 0 : i32
    %c0_i32_0 = arith.constant 0 : i32
    %c0_i32_1 = arith.constant 0 : i32
    return %c0_i32, %c0_i32_0 : i32, i32
  }
  func.func @transform_4(%arg0: i32) -> (i32, i32) {
    %c0_i32 = arith.constant 0 : i32
    %c0_i32_0 = arith.constant 0 : i32
    %c0_i32_1 = arith.constant 0 : i32
    return %c0_i32, %c0_i32_0 : i32, i32
  }
  func.func @transform_5(%arg0: i32) -> (i32, i32) {
    %c0_i32 = arith.constant 0 : i32
    %c0_i32_0 = arith.constant 0 : i32
    %c0_i32_1 = arith.constant 0 : i32
    return %c0_i32, %c0_i32_0 : i32, i32
  }
  func.func @transform_6(%arg0: i32) -> (i32, i32) {
    %c0_i32 = arith.constant 0 : i32
    %c0_i32_0 = arith.constant 0 : i32
    return %arg0, %c0_i32 : i32, i32
  }
  func.func @transform_7(%arg0: i32) -> (i32, i32) {
    %c0_i32 = arith.constant 0 : i32
    %c0_i32_0 = arith.constant 0 : i32
    return %arg0, %c0_i32 : i32, i32
  }
}

</mosaic_0001>

<bundles_post_ra>
// kernel: tpu_custom_call.1
= control target key start
LH: loop header
LB: loop body
LE: loop exit
PB: predicated region body
PF: predicated region fallthrough
CT: control target
= control target key end

     0   :  { %vm33_vm0 = vcmask 261120   ;;  %s1159_s0 = inlined_call_operand.vmem [shape: f32[16,32], index: 0, kind: input, shape index: {}]   ;;  %s1160_s1 = inlined_call_operand.vmem [shape: f32[16,4], index: 1, kind: input, shape index: {}]   ;;  %s1161_s2 = inlined_call_operand.vmem [shape: f32[32,8], index: 2, kind: input, shape index: {}]   ;;  %s1162_s3 = inlined_call_operand.vmem [shape: f32[4,256], index: 3, kind: input, shape index: {}]   ;;  %s1163_s4 = inlined_call_operand.vmem [shape: bf16[32,512], index: 4, kind: input, shape index: {}]   ;;  %s1164_s5 = inlined_call_operand.vmem [shape: bf16[256,32], index: 5, kind: input, shape index: {}]   ;;  %s1165_s6 = inlined_call_operand.hbm [shape: f32[16,32], index: 6, kind: output, shape index: {0}]   ;;  %s1166_s7 = inlined_call_operand.vmem [shape: f32[16,4], index: 7, kind: output, shape index: {1}]  }
   0x1   :  { %v29_v0 = vld [vmem:[%s1161_s2] sm:$0xff]  ;;  %v30_v1 = vld [vmem:[%s1161_s2 + $0x8] sm:$0xff]  ;;  %v31_v2 = vld [vmem:[%s1161_s2 + $0x10] sm:$0xff] }
   0x2   :  { %v815_v3 = vpack.c.bf16 %v30_v1, %v29_v0  ;;  %v32_v4 = vld [vmem:[%s1161_s2 + $0x18] sm:$0xff]  ;;  %v27_v5 = vld [vmem:[%s1159_s0] sm:$0xff]  ;;  %v28_v6 = vld [vmem:[%s1159_s0 + $0x8] sm:$0xff] }
   0x3   :  { %v819_v7 = vpack.c.bf16 %v32_v4, %v31_v2  ;;  %812 = vmatprep.mubr.msk.f32.mxu1 %vm33_vm0, %v27_v5  ;;  %v983_v8 = vpack.c.bf16 %v28_v6, %v27_v5 }
   0x4   :  { %816 = vmatprep.subr.bf16.mxu1 %v815_v3 }
   0x5   :  { %818 = vmatpush3.bf16.msra.mxu1 %v815_v3 }
   0x6   :  { %820 = vmatprep.subr.bf16.mxu1 %v819_v7 }
   0x9   :  { %822 = vmatpush3.bf16.msra.mxu1 %v819_v7 }
   0xc   :  { %813 = vmatmul.mubr.msk.f32.vlgmr.msra.gmra.mrb[0].mxu1 %vm33_vm0, %v28_v6 }
   0xd   :  { %13 = vsyncpa [#allocation3], 0  ;;  %s918_s0 = smov 124   ;;  %v115_v39 = vld [vmem:[%s1160_s1] sm:$0xff]  ;;  %vm159_vm3 = vcmask 31744   ;;  %v116_v42 = vld [vmem:[%s1160_s1 + $0x8] sm:$0xff]  ;;  %v184_v3 = vlaneseq }
   0xe   :  { %s921_s13 = smov [#allocation2]  }
   0xf   :  { %v1012_v4 = vand.u32 127, %v184_v3  ;;  %s729_s14 = sshll.u32 %s921_s13, 4  ;;  %s730_s14 = int_to_ptr.vmem [resolvable:$true] %s729_s14 }
  0x10   :  { %p899_p1 = scmp.lt.s32.totalorder %s730_s14, %s730_s14 }
  0xdf   :  { %v814_v9 = vpop.f32.mrb[0].mxu1 }
  0xe0   :  { %v120_v10 = vand.u32 2147483647, %v814_v9  ;;  %v106_v11 = vpop.f32.mrb[1].mxu1  ;;  %v118_v37 = vmax.f32 %v814_v9, 0.0 }
  0xe1   :  { %v119_v12 = vand.u32 2147483647, %v106_v11  ;;  %v117_v32 = vmax.f32 %v106_v11, 0.0 }
  0xe2   :  { %v122_v13 = vsub.f32 0.0, %v120_v10 }
  0xe3   :  { %v121_v14 = vsub.f32 0.0, %v119_v12 }
  0xe4   :  { %v125_v15 = vmul.f32 1.442695, %v122_v13 }
  0xe5   :  { %v123_v16 = vmul.f32 1.442695, %v121_v14 }
  0xe6   :  { %858 = vpow2.f32 %v125_v15 }
  0xe7   :  { %860 = vpow2.f32 %v123_v16 }
  0xf0   :  { %v859_v17 = vpop.eup %858 }
  0xf1   :  { %v861_v18 = vpop.eup %860  ;;  %v136_v19 = vadd.f32 1.0, %v859_v17  ;;  %v139_v22 = vmul.f32 -0.5, %v859_v17  ;;  %v142_v28 = vand.u32 2147483647, %v859_v17 }
  0xf2   :  { %v127_v20 = vadd.f32 1.0, %v861_v18  ;;  %v130_v21 = vmul.f32 -0.5, %v861_v18  ;;  %v133_v24 = vand.u32 2147483647, %v861_v18 }
  0xf3   :  { %862 = vlog2.f32 %v136_v19  ;;  %v140_v26 = vadd.f32 1.0, %v139_v22  ;;  %vm143_vm2 = vcmp.lt.f32.partialorder %v142_v28, 0.0004427343 }
  0xf4   :  { %864 = vlog2.f32 %v127_v20  ;;  %v131_v23 = vadd.f32 1.0, %v130_v21  ;;  %vm134_vm1 = vcmp.lt.f32.partialorder %v133_v24, 0.0004427343 }
  0xf5   :  { %v141_v34 = vmul.f32 %v859_v17, %v140_v26 }
  0xf6   :  { %v132_v30 = vmul.f32 %v861_v18, %v131_v23 }
  0xfd   :  { %v863_v25 = vpop.eup %862 }
  0xfe   :  { %v865_v27 = vpop.eup %864  ;;  %v138_v31 = vmul.f32 0.6931472, %v863_v25 }
  0xff   :  { %v129_v29 = vmul.f32 0.6931472, %v865_v27 }
 0x100   :  { %v144_v36 = vsel %vm143_vm2, %v141_v34, %v138_v31 }
 0x101   :  { %v135_v33 = vsel %vm134_vm1, %v132_v30, %v129_v29  ;;  %v146_v38 = vadd.f32 %v144_v36, %v118_v37 }
 0x102   :  { %v145_v35 = vadd.f32 %v135_v33, %v117_v32 }
 0x104   :  { %149 = vrot.lane.b32.xlu0 %v145_v35, %s918_s0 }
 0x108   :  { %151 = vrot.lane.b32.xlu0 %v146_v38, %s918_s0 }
 0x176   :  { %v150_v40 = vpop.permute.xlu0 %149 }
 0x177   :  { %v155_v41 = vmul.f32 %v150_v40, %v115_v39 }
 0x179   :  { %v157_v43 = vadd.f32 %v155_v41, %v106_v11 }
 0x17a   :  { %v152_v44 = vpop.permute.xlu0 %151 }
 0x17b   :  { %160 = vst.msk [vmem:[%s1166_s7] sm:$0xff] %vm159_vm3, %v157_v43  ;;  %v156_v45 = vmul.f32 %v152_v44, %v116_v42  ;;  %v162_v46 = vsel %vm159_vm3, %v157_v43, -inf }
 0x17c   :  { %163 = vmax.xlane.f32.xlu1 %v162_v46 }
 0x17d   :  { %v158_v47 = vadd.f32 %v814_v9, %v156_v45 }
 0x17f   :  { %161 = vst.msk [vmem:[%s1166_s7 + $0x8] sm:$0xff] %vm159_vm3, %v158_v47  ;;  %v165_v48 = vsel %vm159_vm3, %v158_v47, -inf }
 0x180   :  { %166 = vmax.xlane.f32.xlu1 %v165_v48 }
 0x209   :  { %v164_v49 = vpop.xlane.xlu1 %163 }
 0x20a   :  { %v168_v50 = vsub.f32 %v157_v43, %v164_v49 }
 0x20c   :  { %v170_v51 = vmul.f32 1.442695, %v168_v50 }
 0x20d   :  { %v167_v52 = vpop.xlane.xlu1 %166 }
 0x20e   :  { %866 = vpow2.f32 %v170_v51  ;;  %v169_v53 = vsub.f32 %v158_v47, %v167_v52 }
 0x210   :  { %v172_v54 = vmul.f32 1.442695, %v169_v53 }
 0x212   :  { %868 = vpow2.f32 %v172_v54 }
 0x218   :  { %v867_v55 = vpop.eup %866 }
 0x219   :  { %v174_v56 = vsel %vm159_vm3, %v867_v55, 0.0 }
 0x21a   :  { %175 = vadd.xlane.f32.xlu0 %v174_v56  ;;  %v829_v56 = vld [vmem:[%s1163_s4] ss:$16 sps:$4 sm:$0xff]  }
 0x21c   :  { %v869_v57 = vpop.eup %868 }
 0x21d   :  { %v177_v58 = vsel %vm159_vm3, %v869_v57, 0.0 }
 0x21e   :  { %178 = vadd.xlane.f32.xlu1 %v177_v58  ;;  %v834_v58 = vld [vmem:[%s1163_s4 + $0x24] ss:$16 sps:$4 sm:$0xff]  }
 0x2a7   :  { %v176_v59 = vpop.xlane.xlu0 %175 }
 0x2a8   :  { %870 = vrcp.f32 %v176_v59  ;;  %v919_v59 = vmov 0  }
 0x2a9   :  { %370 = vmatprep.mubr.bf16.mxu1 %v919_v59 }
 0x2ab   :  { %v179_v60 = vpop.xlane.xlu1 %178 }
 0x2ac   :  { %872 = vrcp.f32 %v179_v60  ;;  %v832_v60 = vld [vmem:[%s1163_s4 + $0x20] ss:$16 sps:$4 sm:$0xff]  }
 0x2b2   :  { %v871_v61 = vpop.eup %870 }
 0x2b3   :  { %v1004_v62 = vmul.f32 %v871_v61, %v867_v55  ;;  %v837_v61 = vld [vmem:[%s1163_s4 + $0xc] ss:$16 sps:$4 sm:$0xff]  }
 0x2b5   :  { %v186_v63 = vsel %vm159_vm3, %v1004_v62, -inf }
 0x2b6   :  { %v873_v0 = vpop.eup %872  ;;  %187 = vmax.xlane.f32.xlu1 %v186_v63  ;;  %v835_v63 = vld [vmem:[%s1163_s4 + $0x8] ss:$16 sps:$4 sm:$0xff]  }
 0x2b7   :  { %v1008_v1 = vmul.f32 %v873_v0, %v869_v57  ;;  %v831_v57 = vld [vmem:[%s1163_s4 + $0x4] ss:$16 sps:$4 sm:$0xff]   ;;  %v840_v0 = vld [vmem:[%s1163_s4 + $0x2c] ss:$16 sps:$4 sm:$0xff]  }
 0x2b8   :  { %338 = vmatprep.subr.bf16.mxu1 %v831_v57 }
 0x2b9   :  { %v189_v2 = vsel %vm159_vm3, %v1008_v1, -inf  ;;  %339 = vmatpush1.bf16.msra.mxu1 %v829_v56 }
 0x2ba   :  { %190 = vmax.xlane.f32.xlu1 %v189_v2  ;;  %340 = vmatprep.subr.bf16.mxu1 %v834_v58  ;;  %v838_v2 = vld [vmem:[%s1163_s4 + $0x28] ss:$16 sps:$4 sm:$0xff]  }
 0x2bd   :  { %341 = vmatpush1.bf16.msra.mxu1 %v832_v60 }
 0x2be   :  { %381 = vmatprep.subr.bf16.mxu1 %v837_v61 }
 0x2c0   :  { %754 = vmatmul.mubr.msk.bf16.vlgmr.msra.gmra.mrb[4].mxu1 %vm33_vm0, %v983_v8 }
 0x2c1   :  { %382 = vmatpush1.bf16.msra.mxu1 %v835_v63  ;;  %413 = vmatprep.mubr.bf16.mxu1 %v919_v59 }
 0x2c2   :  { %383 = vmatprep.subr.bf16.mxu1 %v840_v0 }
 0x2c5   :  { %384 = vmatpush1.bf16.msra.mxu1 %v838_v2 }
 0x2c8   :  { %755 = vmatmul.mubr.msk.bf16.vlgmr.msra.gmra.mrb[8].mxu1 %vm33_vm0, %v983_v8 }
 0x343   :  { %v188_v5 = vpop.xlane.xlu1 %187 }
 0x344   :  { %vm192_vm4 = vcmp.eq.f32.partialorder %v1004_v62, %v188_v5 }
 0x345   :  { %v194_v6 = vsel %vm192_vm4, %v1012_v4, 4  ;;  %vm465_vm4 = vcmask 1043456  }
 0x346   :  { %v196_v7 = vsel %vm159_vm3, %v194_v6, 2147483647 }
 0x347   :  { %v191_v9 = vpop.xlane.xlu1 %190  ;;  %v198_v10 = vshra.s32 %v196_v7, 16  ;;  %v197_v16 = vand.u32 65535, %v196_v7 }
 0x348   :  { %vm193_vm5 = vcmp.eq.f32.partialorder %v1008_v1, %v191_v9 }
 0x349   :  { %v195_v11 = vsel %vm193_vm5, %v1012_v4, 4  ;;  %v200_v12 = vcvt.s32.f32 %v198_v10  ;;  %v199_v18 = vcvt.s32.f32 %v197_v16 }
 0x34a   :  { %v211_v13 = vsel %vm159_vm3, %v195_v11, 2147483647 }
 0x34b   :  { %201 = vmin.xlane.f32.xlu1 %v200_v12  ;;  %v213_v14 = vshra.s32 %v211_v13, 16  ;;  %v212_v19 = vand.u32 65535, %v211_v13 }
 0x34d   :  { %v215_v15 = vcvt.s32.f32 %v213_v14  ;;  %v214_v22 = vcvt.s32.f32 %v212_v19  ;;  %v920_v19 = vmov 0.0  }
 0x34e   :  { %534 = vmatprep.mubr.f32.mxu1 %v920_v19 }
 0x34f   :  { %216 = vmin.xlane.f32.xlu1 %v215_v15 }
 0x3d8   :  { %v202_v17 = vpop.xlane.xlu1 %201 }
 0x3d9   :  { %vm203_vm6 = vcmp.eq.f32.partialorder %v200_v12, %v202_v17  ;;  %v208_v24 = vcvt.f32.s32 %v202_v17 }
 0x3da   :  { %v204_v20 = vsel %vm203_vm6, %v199_v18, inf }
 0x3db   :  { %205 = vmin.xlane.f32.xlu1 %v204_v20  ;;  %v209_v26 = vshll.u32 %v208_v24, 16  ;;  %v844_v20 = vld [vmem:[%s1164_s5 + $0x48] sm:$0xff]   ;;  %v848_v24 = vld [vmem:[%s1164_s5 + $0x58] sm:$0xff]  }
 0x3dc   :  { %v217_v21 = vpop.xlane.xlu1 %216 }
 0x3dd   :  { %vm218_vm7 = vcmp.eq.f32.partialorder %v215_v15, %v217_v21  ;;  %v223_v27 = vcvt.f32.s32 %v217_v21  ;;  %v845_v21 = vld [vmem:[%s1164_s5 + $0x8] sm:$0xff]  }
 0x3de   :  { %v219_v23 = vsel %vm218_vm7, %v214_v22, inf  ;;  %v846_v22 = vld [vmem:[%s1164_s5 + $0x50] sm:$0xff]  }
 0x3df   :  { %220 = vmin.xlane.f32.xlu1 %v219_v23  ;;  %v224_v31 = vshll.u32 %v223_v27, 16  ;;  %v847_v23 = vld [vmem:[%s1164_s5 + $0x10] sm:$0xff]   ;;  %v851_v27 = vld [vmem:[%s1164_s5 + $0x20] sm:$0xff]  }
 0x468   :  { %v206_v25 = vpop.xlane.xlu1 %205 }
 0x469   :  { %v207_v28 = vcvt.f32.s32 %v206_v25  ;;  %v849_v25 = vld [vmem:[%s1164_s5 + $0x18] sm:$0xff]  }
 0x46b   :  { %v1020_v29 = vadd.s32 %v209_v26, %v207_v28  ;;  %v850_v26 = vld [vmem:[%s1164_s5 + $0x60] sm:$0xff]   ;;  %v852_v28 = vld [vmem:[%s1164_s5 + $0x68] sm:$0xff]  }
 0x46c   :  { %v221_v30 = vpop.xlane.xlu1 %220 }
 0x46d   :  { %v222_v32 = vcvt.f32.s32 %v221_v30  ;;  %vm226_vm8 = vcmp.eq.s32.totalorder %v1012_v4, %v1020_v29  ;;  %v372_v29 = vpop.f32.mrb[4].mxu1 }
 0x46e   :  { %v228_v33 = vsel %vm226_vm8, -1.0, %v1004_v62  ;;  %v424_v30 = vsub.f32 0.0, %v372_v29 }
 0x46f   :  { %v1028_v34 = vadd.s32 %v224_v31, %v222_v32  ;;  %v230_v35 = vsel %vm159_vm3, %v228_v33, -inf  ;;  %v374_v31 = vpop.f32.mrb[5].mxu1 }
 0x470   :  { %231 = vmax.xlane.f32.xlu1 %v230_v35  ;;  %v425_v32 = vsub.f32 0.0, %v374_v31 }
 0x471   :  { %vm227_vm9 = vcmp.eq.s32.totalorder %v1012_v4, %v1028_v34  ;;  %v428_v34 = vmul.f32 1.442695, %v424_v30 }
 0x472   :  { %v229_v36 = vsel %vm227_vm9, -1.0, %v1008_v1 }
 0x473   :  { %v233_v37 = vsel %vm159_vm3, %v229_v36, -inf  ;;  %874 = vpow2.f32 %v428_v34 }
 0x474   :  { %234 = vmax.xlane.f32.xlu0 %v233_v37  ;;  %v430_v37 = vmul.f32 1.442695, %v425_v32 }
 0x476   :  { %876 = vpow2.f32 %v430_v37 }
 0x4fd   :  { %v232_v38 = vpop.xlane.xlu1 %231 }
 0x4fe   :  { %vm236_vm10 = vcmp.eq.f32.partialorder %v228_v33, %v232_v38  ;;  %v376_v33 = vpop.f32.mrb[6].mxu1 }
 0x4ff   :  { %v238_v39 = vsel %vm236_vm10, %v1012_v4, 4  ;;  %v426_v35 = vsub.f32 0.0, %v376_v33 }
 0x500   :  { %v240_v40 = vsel %vm159_vm3, %v238_v39, 2147483647 }
 0x501   :  { %v235_v41 = vpop.xlane.xlu0 %234  ;;  %v242_v42 = vshra.s32 %v240_v40, 16  ;;  %v241_v48 = vand.u32 65535, %v240_v40  ;;  %v432_v39 = vmul.f32 1.442695, %v426_v35 }
 0x502   :  { %vm237_vm11 = vcmp.eq.f32.partialorder %v229_v36, %v235_v41  ;;  %v378_v36 = vpop.f32.mrb[7].mxu1 }
 0x503   :  { %v239_v43 = vsel %vm237_vm11, %v1012_v4, 4  ;;  %v244_v44 = vcvt.s32.f32 %v242_v42  ;;  %v243_v50 = vcvt.s32.f32 %v241_v48  ;;  %v427_v38 = vsub.f32 0.0, %v378_v36  ;;  %v415_v41 = vpop.f32.mrb[8].mxu1 }
 0x504   :  { %v255_v45 = vsel %vm159_vm3, %v239_v43, 2147483647  ;;  %878 = vpow2.f32 %v432_v39  ;;  %v417_v42 = vpop.f32.mrb[9].mxu1 }
 0x505   :  { %245 = vmin.xlane.f32.xlu1 %v244_v44  ;;  %v257_v46 = vshra.s32 %v255_v45, 16  ;;  %v256_v51 = vand.u32 65535, %v255_v45  ;;  %v434_v40 = vmul.f32 1.442695, %v427_v38  ;;  %v419_v43 = vpop.f32.mrb[10].mxu1  ;;  %v875_v45 = vpop.eup %874 }
 0x507   :  { %v259_v47 = vcvt.s32.f32 %v257_v46  ;;  %v258_v54 = vcvt.s32.f32 %v256_v51  ;;  %880 = vpow2.f32 %v434_v40  ;;  %v877_v46 = vpop.eup %876 }
 0x509   :  { %260 = vmin.xlane.f32.xlu0 %v259_v47 }
 0x50e   :  { %v879_v48 = vpop.eup %878 }
 0x50f   :  { %v438_v51 = vadd.f32 1.0, %v879_v48 }
 0x592   :  { %v246_v49 = vpop.xlane.xlu1 %245 }
 0x593   :  { %vm247_vm12 = vcmp.eq.f32.partialorder %v244_v44, %v246_v49  ;;  %v252_v3 = vcvt.f32.s32 %v246_v49  ;;  %v421_v44 = vpop.f32.mrb[11].mxu1  ;;  %v437_v49 = vadd.f32 1.0, %v877_v46 }
 0x594   :  { %v248_v52 = vsel %vm247_vm12, %v243_v50, inf  ;;  %v881_v50 = vpop.eup %880 }
 0x595   :  { %249 = vmin.xlane.f32.xlu1 %v248_v52  ;;  %v253_v6 = vshll.u32 %v252_v3, 16  ;;  %v439_v52 = vadd.f32 1.0, %v881_v50 }
 0x596   :  { %v261_v53 = vpop.xlane.xlu0 %260 }
 0x597   :  { %vm262_vm13 = vcmp.eq.f32.partialorder %v259_v47, %v261_v53  ;;  %v267_v7 = vcvt.f32.s32 %v261_v53  ;;  %v436_v47 = vadd.f32 1.0, %v875_v45 }
 0x598   :  { %v263_v55 = vsel %vm262_vm13, %v258_v54, inf }
 0x599   :  { %264 = vmin.xlane.f32.xlu0 %v263_v55  ;;  %v268_v12 = vshll.u32 %v267_v7, 16  ;;  %882 = vrcp.f32 %v436_v47 }
 0x59a   :  { %884 = vrcp.f32 %v437_v49 }
 0x59b   :  { %886 = vrcp.f32 %v438_v51 }
 0x59c   :  { %888 = vrcp.f32 %v439_v52 }
 0x5a3   :  { %v883_v53 = vpop.eup %882 }
 0x5a4   :  { %v885_v54 = vpop.eup %884  ;;  %v448_v55 = vmul.f32 %v883_v53, %v372_v29 }
 0x5a5   :  { %v887_v56 = vpop.eup %886  ;;  %v449_v57 = vmul.f32 %v885_v54, %v374_v31 }
 0x5a6   :  { %v889_v58 = vpop.eup %888  ;;  %v450_v59 = vmul.f32 %v887_v56, %v376_v33  ;;  %v452_v60 = vmul.f32 %v448_v55, %v415_v41 }
 0x5a7   :  { %v451_v61 = vmul.f32 %v889_v58, %v378_v36  ;;  %v453_v63 = vmul.f32 %v449_v57, %v417_v42 }
 0x5a8   :  { %v454_v0 = vmul.f32 %v450_v59, %v419_v43 }
 0x5a9   :  { %v455_v2 = vmul.f32 %v451_v61, %v421_v44 }
 0x622   :  { %v250_v5 = vpop.xlane.xlu1 %249 }
 0x623   :  { %v251_v9 = vcvt.f32.s32 %v250_v5 }
 0x625   :  { %v254_v10 = vadd.s32 %v253_v6, %v251_v9 }
 0x626   :  { %v265_v11 = vpop.xlane.xlu0 %264 }
 0x627   :  { %v266_v13 = vcvt.f32.s32 %v265_v11  ;;  %vm270_vm14 = vcmp.eq.s32.totalorder %v1012_v4, %v254_v10  ;;  %v853_v11 = vld [vmem:[%s1164_s5 + $0x28] sm:$0xff]  }
 0x628   :  { %vm272_vm15 = vmor %vm226_vm8, %vm270_vm14 }
 0x629   :  { %v269_v14 = vadd.s32 %v268_v12, %v266_v13  ;;  %v1075_v15 = vsel %vm272_vm15, %v1004_v62, 0.0  ;;  %v456_v62 = vld [vmem:[%s1162_s3] sm:$0xff]  ;;  %v854_v12 = vld [vmem:[%s1164_s5 + $0x70] sm:$0xff]  }
 0x62a   :  { %v276_v8 = vsel %vm159_vm3, %v1075_v15, 0.0  ;;  %v458_v18 = vcombine.high %v456_v62, %v456_v62  ;;  %v855_v13 = vld [vmem:[%s1164_s5 + $0x30] sm:$0xff]  }
 0x62b   :  { %277 = vadd.xlane.f32.xlu1 %v276_v8  ;;  %vm271_vm1 = vcmp.eq.s32.totalorder %v1012_v4, %v269_v14  ;;  %v843_v4 = vld [vmem:[%s1164_s5] sm:$0xff]   ;;  %v856_v14 = vld [vmem:[%s1164_s5 + $0x78] sm:$0xff]  }
 0x62c   :  { %vm273_vm2 = vmor %vm227_vm9, %vm271_vm1  ;;  %756 = vmatprep.subr.msk.mxu1 %vm465_vm4, %v458_v18 }
 0x62d   :  { %v1084_v16 = vsel %vm273_vm2, %v1008_v1, 0.0  ;;  %757 = vmatpush1.msk.msra.mxu1 %vm465_vm4, %v456_v62  ;;  %v842_v1 = vld [vmem:[%s1164_s5 + $0x40] sm:$0xff]  }
 0x62e   :  { %v279_v17 = vsel %vm159_vm3, %v1084_v16, 0.0  ;;  %782 = vmatprep.subr.bf16.mxu0 %v842_v1 }
 0x62f   :  { %280 = vadd.xlane.f32.xlu0 %v279_v17  ;;  %783 = vmatpush3.bf16.msra.mxu0 %v843_v4 }
 0x630   :  { %784 = vmatprep.subr.bf16.mxu0 %v844_v20 }
 0x633   :  { %785 = vmatpush3.bf16.msra.mxu0 %v845_v21 }
 0x634   :  { %786 = vmatprep.subr.bf16.mxu0 %v846_v22 }
 0x637   :  { %787 = vmatpush3.bf16.msra.mxu0 %v847_v23 }
 0x638   :  { %788 = vmatprep.subr.bf16.mxu0 %v848_v24 }
 0x63b   :  { %789 = vmatpush3.bf16.msra.mxu0 %v849_v25 }
 0x63c   :  { %790 = vmatprep.subr.bf16.mxu0 %v850_v26 }
 0x63f   :  { %791 = vmatpush3.bf16.msra.mxu0 %v851_v27 }
 0x640   :  { %792 = vmatprep.subr.bf16.mxu0 %v852_v28 }
 0x643   :  { %793 = vmatpush3.bf16.msra.mxu0 %v853_v11 }
 0x644   :  { %794 = vmatprep.subr.bf16.mxu0 %v854_v12 }
 0x647   :  { %795 = vmatpush3.bf16.msra.mxu0 %v855_v13 }
 0x648   :  { %796 = vmatprep.subr.bf16.mxu0 %v856_v14 }
 0x6b8   :  { %v278_v3 = vpop.xlane.xlu1 %277 }
 0x6b9   :  { %890 = vrcp.f32 %v278_v3 }
 0x6bc   :  { %v281_v5 = vpop.xlane.xlu0 %280 }
 0x6bd   :  { %892 = vrcp.f32 %v281_v5 }
 0x6c3   :  { %v891_v6 = vpop.eup %890 }
 0x6c4   :  { %v283_v7 = vmul.f32 %v891_v6, %v1075_v15  ;;  %v857_v15 = vld [vmem:[%s1164_s5 + $0x38] sm:$0xff]   ;;  %s894_s5 = scalar_lea.vmem %s730_s14, 256 }
 0x6c5   :  { %797 = vmatpush3.bf16.msra.mxu0 %v857_v15  ;;  %p895_p0 = scmp.ne.s32.totalorder %s730_s14, %s894_s5  ;;  %p900_p2 = scmp.lt.s32.totalorder %s894_s5, %s894_s5 }
 0x6c6   :  { %758 = vmatmul.mubr.msk.f32.vlgmr.msra.gmra.mrb[2].mxu1 %vm159_vm3, %v283_v7 }
 0x6c7   :  { %v893_v9 = vpop.eup %892  ;;  %540 = vmatprep.mubr.f32.mxu1 %v920_v19  ;;  %p901_p3 = por %p900_p2, %p899_p1 }
 0x6c8   :  { %v285_v10 = vmul.f32 %v893_v9, %v1084_v16 }
 0x6c9   :  { %p902_p4 = pnand %p901_p3, %p895_p0 }
 0x6ca   :  { %759 = vmatmul.mubr.msk.f32.gmra.mrb[12].mxu1 %vm159_vm3, %v285_v10 }
 0x799   :  { %v536_v8 = vpop.f32.mrb[2].mxu1 }
 0x79a   :  { %v547_v16 = vmul.f32 %v536_v8, %v452_v60  ;;  %v538_v17 = vpop.f32.mrb[3].mxu1 }
 0x79b   :  { %v548_v62 = vmul.f32 %v538_v17, %v453_v63 }
 0x79d   :  { %v542_v18 = vpop.f32.mrb[12].mxu1 }
 0x79e   :  { %v549_v19 = vmul.f32 %v542_v18, %v454_v0  ;;  %v544_v1 = vpop.f32.mrb[13].mxu1 }
 0x79f   :  { %v550_v4 = vmul.f32 %v544_v1, %v455_v2 }
 0x7a0   :  { %v551_v20 = vpack.c.bf16 %v549_v19, %v547_v16 }
 0x7a1   :  { %v552_v21 = vpack.c.bf16 %v550_v4, %v548_v62 }
 0x7a3   :  { %713 = vmatprep.mubr.bf16.mxu0 %v552_v21 }
 0x7a4   :  { %714 = vmatmul.mubr.bf16.vlgmr.msra.gmra.mrb[0].mxu0 %v551_v20 }
 0x877   :  { %v798_v22 = vpop.f32.mrb[0].mxu0 }
 0x878   :  { %v799_v23 = vpop.f32.mrb[1].mxu0 }
 0x879   :  { %v800_v24 = vadd.f32 %v799_v23, %v798_v22  ;;  %v801_v25 = vpop.f32.mrb[2].mxu0 }
 0x87a   :  { %v802_v26 = vpop.f32.mrb[3].mxu0 }
 0x87b   :  { %722 = vst.msk [vmem:[#allocation2] sm:$0xff] %vm33_vm0, %v800_v24  ;;  %v803_v27 = vadd.f32 %v802_v26, %v801_v25 }
 0x87d   :  { %723 = vst.msk [vmem:[#allocation2 + $0x8] sm:$0xff] %vm33_vm0, %v803_v27 }
 0x87e   :  { %905 = shalt.err (!%p902_p4)
}
 0x87f   :  { %s906_s16 = scalar_lea.hbm %s1165_s6, 256 }
 0x880   :  { %p907_p5 = scmp.ne.s32.totalorder %s1165_s6, %s906_s16  ;;  %p910_p6 = scmp.lt.u32.totalorder %s906_s16, %s1165_s6 }
 0x882   :  { %p912_p7 = pnand %p910_p6, %p907_p5 }
 0x884   :  { %915 = shalt.err (!%p912_p7)
}
 0x885   :  { %s922_s7 = smov 128   ;;  %s923_s20 = smov 8  }
 0x886   :  { %735 = dma.vmem_to_hbm [thread:$0]  %s730_s14, 256, %s1165_s6, [#allocation3], %s922_s7, %s922_s7, %s923_s20  }
 0x887   :  { %916 = dma.done.wait [#allocation3], 256  }
 0x888   :  { %917 = vsyncadd [#allocation3], 4294967040 }
 0x889   :  { %743 = vsyncpa [#allocation3], 1 }

</bundles_post_ra>
